<compile_context>
chip_gen: v7x
topology: tpu7x:2x2x1
jax: 0.10.0
libtpu: 0.0.40
codegen_flags: <defaults>
</compile_context>

<pallas_src>
import functools

import jax
import jax.numpy as jnp
from jax.experimental import pallas as pl
from jax.experimental.pallas import tpu as pltpu


def _hardswish(x):
    # matches torch.nn.Hardswish: x * relu6(x + 3) / 6
    return x * jnp.clip(x + 3.0, 0.0, 6.0) * (1.0 / 6.0)


# ----------------------------------------------------------------------------
# Per-generation VMEM budgeting.
# ----------------------------------------------------------------------------
def _tpu_budgets():
    """Return (per_block_budget_bytes, vmem_limit_bytes, num_tensorcores)."""
    vmem_cap = 128 << 20          # v5e / v6e physical VMEM
    num_tc = 1
    try:
        info = pltpu.get_tpu_info()
        cap = getattr(info, "vmem_capacity_bytes", None)
        if cap:
            vmem_cap = int(cap)
    except Exception:
        pass
    try:
        kind = jax.devices()[0].device_kind.lower()
        if "v7" in kind:          # v7x: 64 MiB VMEM per TC, 2 TCs per chip
            num_tc = 2
            vmem_cap = min(vmem_cap, 64 << 20)
    except Exception:
        pass
    # Scoped limit: well above the 16/32 MiB defaults, with headroom below
    # physical (esp. on v7x where double-buffered blocks must fit 64 MiB).
    vmem_limit = min(64 << 20, int(vmem_cap * 0.65))
    # in + out double-buffered = 4 blocks, plus weights / compiler scratch.
    per_block = vmem_limit // 6
    return per_block, vmem_limit, num_tc


def _choose_batch_tile(B, per_batch_bytes, block_budget, num_tc):
    """Pick TB (a divisor of B). Prefer enough grid steps for DMA/compute
    overlap (>=4 and an even split when two TensorCores are present, >=3
    otherwise), then the biggest block that fits the per-block budget.
    Returns None if even a single batch element does not fit (fallback)."""
    cap = block_budget // max(1, per_batch_bytes)
    if cap < 1:
        return None
    min_steps = 4 if num_tc >= 2 else 3
    best, best_key = 1, None
    for d in range(1, B + 1):
        if B % d or d > cap:
            continue
        steps = B // d
        even = (num_tc < 2) or (steps % num_tc == 0)
        key = (steps >= min_steps, even, d)
        if best_key is None or key > best_key:
            best, best_key = d, key
    return best


def _choose_hw_tile(C, HW, itemsize, block_budget):
    """HW tile for the fallback path: biggest multiple of 128 that fits."""
    max_thw = max(1, block_budget // max(1, C * itemsize))
    thw = (max_thw // 128) * 128
    if thw <= 0:
        thw = 128
    if thw >= HW:
        return HW
    return thw


# ----------------------------------------------------------------------------
# Main (single-pass) kernel: one (TB, C_in, HW) block per grid step.
# ----------------------------------------------------------------------------
def _se_block_kernel(x_ref, w1t_ref, w2t_ref, o_ref, *, inv_hw):
    # x_ref / o_ref: (TB, C_in, HW) in the input dtype.
    x = x_ref[...]

    # squeeze: spatial mean, accumulated in f32.
    pooled = jnp.sum(x, axis=-1, dtype=jnp.float32) * inv_hw        # (TB, C_in)

    # excitation: lane-dense matmuls against pre-transposed, pre-cast weights
    # (no per-step weight cast in the hot loop).
    h = jnp.dot(pooled, w1t_ref[...],
                preferred_element_type=jnp.float32)                 # (TB, C_out)
    h = _hardswish(h)
    g = jnp.dot(h, w2t_ref[...],
                preferred_element_type=jnp.float32)                 # (TB, C_in)
    gate = jax.nn.sigmoid(g)                                        # (TB, C_in) f32

    # scale: broadcast gate over the spatial (lane) axis in the native dtype
    # (no f32 copy of the big tile).
    o_ref[...] = x * gate.astype(o_ref.dtype)[:, :, None]


# ----------------------------------------------------------------------------
# Fallback kernels (two-pass, HW-tiled) for oversized (C_in, HW) slabs.
# ----------------------------------------------------------------------------
def _se_pool_kernel(x_ref, sums_ref, *, hw, thw):
    hw_idx = pl.program_id(1)

    @pl.when(hw_idx == 0)
    def _():
        sums_ref[...] = jnp.zeros_like(sums_ref)

    x = x_ref[...]                                                  # (1, C, THW)
    if hw % thw:
        # mask the ragged last tile (OOB lanes of a partial block are undefined)
        lane = jax.lax.broadcasted_iota(jnp.int32, x.shape, dimension=2)
        x = jnp.where(hw_idx * thw + lane < hw, x, 0)
    sums_ref[...] += jnp.sum(x, axis=-1, keepdims=True, dtype=jnp.float32)


def _se_apply_kernel(x_ref, gate_ref, o_ref):
    # gate: (1, C, 1) broadcast over the lane (spatial) axis.
    o_ref[...] = x_ref[...] * gate_ref[...]


def _se_block_fallback(x_flat, w1t, w2t, HW, block_budget, vmem_limit):
    B, C_in, _ = x_flat.shape
    itemsize = jnp.dtype(x_flat.dtype).itemsize
    thw = _choose_hw_tile(C_in, HW, itemsize, block_budget)
    n_hw = pl.cdiv(HW, thw)

    # Pass 1: per-channel spatial sums (accumulator resident across the HW axis).
    sums = pl.pallas_call(
        functools.partial(_se_pool_kernel, hw=HW, thw=thw),
        out_shape=jax.ShapeDtypeStruct((B, C_in, 1), jnp.float32),
        grid_spec=pltpu.PrefetchScalarGridSpec(
            num_scalar_prefetch=0,
            grid=(B, n_hw),
            in_specs=[pl.BlockSpec((1, C_in, thw), lambda b, h: (b, 0, h))],
            out_specs=pl.BlockSpec((1, C_in, 1), lambda b, h: (b, 0, 0)),
        ),
        compiler_params=pltpu.CompilerParams(
            dimension_semantics=("parallel", "arbitrary"),
            vmem_limit_bytes=vmem_limit),
        cost_estimate=pl.CostEstimate(
            flops=B * C_in * HW,
            transcendentals=0,
            bytes_accessed=B * C_in * HW * itemsize + B * C_in * 4),
    )(x_flat)

    # Tiny excitation in plain JAX (B x C matmuls; negligible vs HBM traffic).
    pooled = sums[:, :, 0] * (1.0 / HW)                             # (B, C_in) f32
    h = _hardswish(pooled @ w1t)                                    # (B, C_out)
    gate = jax.nn.sigmoid(h @ w2t).astype(x_flat.dtype)             # (B, C_in)
    gate = gate[:, :, None]                                         # (B, C_in, 1)

    # Pass 2: apply the per-channel gate per HW tile (OOB writes are clipped).
    return pl.pallas_call(
        _se_apply_kernel,
        out_shape=jax.ShapeDtypeStruct(x_flat.shape, x_flat.dtype),
        grid_spec=pltpu.PrefetchScalarGridSpec(
            num_scalar_prefetch=0,
            grid=(B, n_hw),
            in_specs=[pl.BlockSpec((1, C_in, thw), lambda b, h: (b, 0, h)),
                      pl.BlockSpec((1, C_in, 1), lambda b, h: (b, 0, 0))],
            out_specs=pl.BlockSpec((1, C_in, thw), lambda b, h: (b, 0, h)),
        ),
        compiler_params=pltpu.CompilerParams(
            dimension_semantics=("parallel", "parallel"),
            vmem_limit_bytes=vmem_limit),
        cost_estimate=pl.CostEstimate(
            flops=B * C_in * HW,
            transcendentals=0,
            bytes_accessed=2 * B * C_in * HW * itemsize),
    )(x_flat, gate)


# ----------------------------------------------------------------------------
# Public wrapper.
# ----------------------------------------------------------------------------
def se_block(x, w1, w2, *, block_budget_bytes=None):
    """x: (B, C_in, H, W) NCHW; w1: (C_out, C_in); w2: (C_in, C_out)."""
    B, C_in, H, W = x.shape
    C_out = w1.shape[0]
    HW = H * W
    itemsize = jnp.dtype(x.dtype).itemsize

    block_budget, vmem_limit, num_tc = _tpu_budgets()
    if block_budget_bytes is not None:
        block_budget = block_budget_bytes

    # No padding and no post-kernel slice: the last block dim is the full,
    # unpadded HW -> no extra HBM passes, no inflated DMA traffic.
    x_flat = x.reshape(B, C_in, HW)
    # Transpose + cast the 1x1-conv weights ONCE in the wrapper (they are
    # grid-invariant blocks and stay VMEM-resident; the kernel never re-casts).
    w1t = w1.T.astype(jnp.float32)          # (C_in, C_out)
    w2t = w2.T.astype(jnp.float32)          # (C_out, C_in)

    per_batch_bytes = C_in * HW * itemsize
    TB = _choose_batch_tile(B, per_batch_bytes, block_budget, num_tc)

    if TB is None:
        out_flat = _se_block_fallback(x_flat, w1t, w2t, HW,
                                      block_budget, vmem_limit)
    else:
        kernel = functools.partial(_se_block_kernel, inv_hw=1.0 / HW)
        out_flat = pl.pallas_call(
            kernel,
            out_shape=jax.ShapeDtypeStruct((B, C_in, HW), x.dtype),
            grid_spec=pltpu.PrefetchScalarGridSpec(
                num_scalar_prefetch=0,
                grid=(B // TB,),
                in_specs=[
                    pl.BlockSpec((TB, C_in, HW), lambda b: (b, 0, 0)),
                    # constant block index -> weights DMA'd once, kept resident
                    pl.BlockSpec((C_in, C_out), lambda b: (0, 0)),   # w1.T
                    pl.BlockSpec((C_out, C_in), lambda b: (0, 0)),   # w2.T
                ],
                out_specs=pl.BlockSpec((TB, C_in, HW), lambda b: (b, 0, 0)),
            ),
            compiler_params=pltpu.CompilerParams(
                dimension_semantics=("parallel",),
                vmem_limit_bytes=vmem_limit),
            cost_estimate=pl.CostEstimate(
                flops=2 * B * C_in * HW + 4 * B * C_in * C_out,
                transcendentals=B * C_in,
                bytes_accessed=2 * B * C_in * HW * itemsize
                               + 2 * C_in * C_out * 4),
        )(x_flat, w1t, w2t)

    return out_flat.reshape(B, C_in, H, W)


def reference_se_block(x, w1, w2):
    # Pure-JAX reference mirroring the PyTorch forward.
    pooled = jnp.mean(x, axis=(2, 3), keepdims=True)             # (B, C_in, 1, 1)
    h = jnp.einsum('oc,bcij->boij', w1, pooled)                  # (B, C_out, 1, 1)
    h = _hardswish(h)
    g = jnp.einsum('co,boij->bcij', w2, h)                       # (B, C_in, 1, 1)
    gate = jax.nn.sigmoid(g)
    return x * gate


if __name__ == "__main__":
    key = jax.random.PRNGKey(0)

    def make_case(k, B, C_in, C_out, H, W):
        kx, k1, k2 = jax.random.split(k, 3)
        x = jax.random.normal(kx, (B, C_in, H, W), dtype=jnp.float32)
        # deterministic "kaiming-ish" init for the two 1x1 conv weights (bias=False)
        w1 = jax.random.normal(k1, (C_out, C_in), dtype=jnp.float32) * (1.0 / C_in) ** 0.5
        w2 = jax.random.normal(k2, (C_in, C_out), dtype=jnp.float32) * (1.0 / C_out) ** 0.5
        return x, w1, w2

    ka, kb, kc = jax.random.split(key, 3)

    # 1) main path, HW a multiple of 128 (unmasked lane-dense stores)
    x, w1, w2 = make_case(ka, 2, 4, 8, 16, 16)
    out = jax.block_until_ready(se_block(x, w1, w2))
    ref = reference_se_block(x, w1, w2)
    assert jnp.allclose(out, ref, atol=1e-5, rtol=1e-5), "mismatch (main, HW%128==0)"

    # 2) main path, ragged HW (full-extent unpadded block, masked stores)
    x, w1, w2 = make_case(kb, 2, 8, 4, 7, 7)
    out = jax.block_until_ready(se_block(x, w1, w2))
    ref = reference_se_block(x, w1, w2)
    assert jnp.allclose(out, ref, atol=1e-5, rtol=1e-5), "mismatch (main, ragged HW)"

    # 3) two-pass fallback (forced via tiny per-block budget), ragged HW tile
    x, w1, w2 = make_case(kc, 2, 4, 8, 15, 20)
    out = jax.block_until_ready(se_block(x, w1, w2, block_budget_bytes=2048))
    ref = reference_se_block(x, w1, w2)
    assert jnp.allclose(out, ref, atol=1e-5, rtol=1e-5), "mismatch (fallback)"

    print("KERNEL_OK")
</pallas_src>

<mosaic_0001>
module attributes {stable_mosaic.version = 11 : i64} {
  func.func @_se_block_kernel(%arg0: i32, %arg1: memref<2x4x256xf32, #tpu.memory_space<vmem>>, %arg2: memref<4x8xf32, #tpu.memory_space<vmem>>, %arg3: memref<8x4xf32, #tpu.memory_space<vmem>>, %arg4: memref<2x4x256xf32, #tpu.memory_space<vmem>>) attributes {dimension_semantics = [#tpu.dimension_semantics<parallel>], iteration_bounds = array<i64: 1>, scalar_prefetch = 0 : i64, scratch_operands = 0 : i64, tpu.core_type = #tpu.core_type<tc>, window_params = [{transform_indices = @transform_0, window_bounds = array<i64: 2, 4, 256>}, {pipeline_mode = #tpu.pipeline_mode<synchronous>, transform_indices = @transform_1, window_bounds = array<i64: 4, 8>}, {pipeline_mode = #tpu.pipeline_mode<synchronous>, transform_indices = @transform_2, window_bounds = array<i64: 8, 4>}, {transform_indices = @transform_3, window_bounds = array<i64: 2, 4, 256>}]} {
    %c0 = arith.constant 0 : index
    %c0_0 = arith.constant 0 : index
    %c0_1 = arith.constant 0 : index
    %0 = vector.load %arg1[%c0, %c0_0, %c0_1] : memref<2x4x256xf32, #tpu.memory_space<vmem>>, vector<2x4x256xf32>
    %cst = arith.constant dense<0.000000e+00> : vector<2x4xf32>
    %1 = vector.multi_reduction <add>, %0, %cst [2] : vector<2x4x256xf32> to vector<2x4xf32>
    %cst_2 = arith.constant 3.906250e-03 : f32
    %2 = vector.broadcast %cst_2 : f32 to vector<2x4xf32>
    %3 = arith.mulf %1, %2 : vector<2x4xf32>
    %c0_3 = arith.constant 0 : index
    %c0_4 = arith.constant 0 : index
    %4 = vector.load %arg2[%c0_3, %c0_4] : memref<4x8xf32, #tpu.memory_space<vmem>>, vector<4x8xf32>
    %cst_5 = arith.constant dense<0.000000e+00> : vector<2x8xf32>
    %5 = tpu.matmul %3, %4, %cst_5 {dimension_numbers = #tpu.dot_dimension_numbers<[1], [0], [0], [1], [0, 0, 1, 1], [], []>} : vector<2x4xf32>, vector<4x8xf32>, vector<2x8xf32> -> vector<2x8xf32>
    %cst_6 = arith.constant 3.000000e+00 : f32
    %6 = vector.broadcast %cst_6 : f32 to vector<2x8xf32>
    %7 = arith.addf %5, %6 : vector<2x8xf32>
    %cst_7 = arith.constant 0.000000e+00 : f32
    %cst_8 = arith.constant 6.000000e+00 : f32
    %8 = vector.broadcast %cst_7 : f32 to vector<2x8xf32>
    %9 = arith.maximumf %8, %7 : vector<2x8xf32>
    %10 = vector.broadcast %cst_8 : f32 to vector<2x8xf32>
    %11 = arith.minimumf %10, %9 : vector<2x8xf32>
    %12 = arith.mulf %5, %11 : vector<2x8xf32>
    %cst_9 = arith.constant 0.166666672 : f32
    %13 = vector.broadcast %cst_9 : f32 to vector<2x8xf32>
    %14 = arith.mulf %12, %13 : vector<2x8xf32>
    %c0_10 = arith.constant 0 : index
    %c0_11 = arith.constant 0 : index
    %15 = vector.load %arg3[%c0_10, %c0_11] : memref<8x4xf32, #tpu.memory_space<vmem>>, vector<8x4xf32>
    %cst_12 = arith.constant dense<0.000000e+00> : vector<2x4xf32>
    %16 = tpu.matmul %14, %15, %cst_12 {dimension_numbers = #tpu.dot_dimension_numbers<[1], [0], [0], [1], [0, 0, 1, 1], [], []>} : vector<2x8xf32>, vector<8x4xf32>, vector<2x4xf32> -> vector<2x4xf32>
    %17 = arith.negf %16 : vector<2x4xf32>
    %18 = math.exp %17 : vector<2x4xf32>
    %cst_13 = arith.constant 1.000000e+00 : f32
    %19 = vector.broadcast %cst_13 : f32 to vector<2x4xf32>
    %20 = arith.addf %19, %18 : vector<2x4xf32>
    %21 = arith.divf %19, %20 : vector<2x4xf32>
    %22 = vector.shape_cast %21 : vector<2x4xf32> to vector<2x4x1xf32>
    %23 = vector.broadcast %22 : vector<2x4x1xf32> to vector<2x4x256xf32>
    %24 = arith.mulf %0, %23 : vector<2x4x256xf32>
    %c0_14 = arith.constant 0 : index
    %c0_15 = arith.constant 0 : index
    %c0_16 = arith.constant 0 : index
    %25 = vector.load %arg4[%c0_14, %c0_15, %c0_16] : memref<2x4x256xf32, #tpu.memory_space<vmem>>, vector<2x4x256xf32>
    tpu.vector_store %arg4[%c0_14, %c0_15, %c0_16], %24 {strides = array<i32>} : memref<2x4x256xf32, #tpu.memory_space<vmem>>, vector<2x4x256xf32>,
    return
  }
  func.func @transform_0(%arg0: i32) -> (i32, i32, i32) {
    %c0_i32 = arith.constant 0 : i32
    %c0_i32_0 = arith.constant 0 : i32
    %c0_i32_1 = arith.constant 0 : i32
    return %arg0, %c0_i32, %c0_i32_0 : i32, i32, i32
  }
  func.func @transform_1(%arg0: i32) -> (i32, i32) {
    %c0_i32 = arith.constant 0 : i32
    %c0_i32_0 = arith.constant 0 : i32
    %c0_i32_1 = arith.constant 0 : i32
    return %c0_i32, %c0_i32_0 : i32, i32
  }
  func.func @transform_2(%arg0: i32) -> (i32, i32) {
    %c0_i32 = arith.constant 0 : i32
    %c0_i32_0 = arith.constant 0 : i32
    %c0_i32_1 = arith.constant 0 : i32
    return %c0_i32, %c0_i32_0 : i32, i32
  }
  func.func @transform_3(%arg0: i32) -> (i32, i32, i32) {
    %c0_i32 = arith.constant 0 : i32
    %c0_i32_0 = arith.constant 0 : i32
    %c0_i32_1 = arith.constant 0 : i32
    return %arg0, %c0_i32, %c0_i32_0 : i32, i32, i32
  }
}

</mosaic_0001>

<bundles_post_ra>
// kernel: tpu_custom_call.1
= control target key start
LH: loop header
LB: loop body
LE: loop exit
PB: predicated region body
PF: predicated region fallthrough
CT: control target
= control target key end

     0   :  { %8 = vsyncpa [#allocation3], 0  ;;  %s538_s0 = inlined_call_operand.hbm [shape: f32[2,4,256], index: 0, kind: input, shape index: {}]   ;;  %s539_s1 = inlined_call_operand.hbm [shape: f32[4,8], index: 1, kind: input, shape index: {}]   ;;  %s540_s2 = inlined_call_operand.hbm [shape: f32[8,4], index: 2, kind: input, shape index: {}]   ;;  %s541_s3 = inlined_call_operand.hbm [shape: f32[2,4,256], index: 3, kind: output, shape index: {}]  }
   0x1   :  { %9 = vsyncpa [#allocation6], 0 }
   0x2   :  { %10 = vsyncpa [#allocation4], 0  ;;  %s431_s12 = smov [#allocation5]   ;;  %s432_s14 = smov [#allocation2]  }
   0x3   :  { %s29_s13 = sshll.u32 %s431_s12, 4  ;;  %s16_s15 = sshll.u32 %s432_s14, 4  ;;  %s30_s13 = int_to_ptr.vmem [resolvable:$true] %s29_s13  ;;  %s460_s15 = int_to_ptr.vmem [resolvable:$true] %s16_s15 }
   0x4   :  { %s337_s18 = scalar_lea.hbm %s539_s1, 64 }
   0x5   :  { %p338_p0 = scmp.ne.s32.totalorder %s539_s1, %s337_s18  ;;  %p341_p1 = scmp.lt.u32.totalorder %s337_s18, %s539_s1 }
   0x7   :  { %p343_p2 = pnand %p341_p1, %p338_p0 }
   0x9   :  { %346 = shalt.err (!%p343_p2)
}
   0xa   :  { %s347_s23 = scalar_lea.vmem %s30_s13, 64  ;;  %p352_p4 = scmp.lt.s32.totalorder %s30_s13, %s30_s13 }
   0xb   :  { %p348_p3 = scmp.ne.s32.totalorder %s30_s13, %s347_s23  ;;  %p353_p5 = scmp.lt.s32.totalorder %s347_s23, %s347_s23 }
   0xd   :  { %p354_p6 = por %p353_p5, %p352_p4 }
   0xf   :  { %p355_p7 = pnand %p354_p6, %p348_p3 }
  0x11   :  { %358 = shalt.err (!%p355_p7)
}
  0x12   :  { %32 = dma.hbm_to_vmem [thread:$0]  %s539_s1, 64, %s30_s13, [#allocation6]  }
  0x13   :  { %s359_s28 = scalar_lea.hbm %s538_s0, 256 }
  0x14   :  { %p360_p8 = scmp.ne.s32.totalorder %s538_s0, %s359_s28  ;;  %p363_p9 = scmp.lt.u32.totalorder %s359_s28, %s538_s0 }
  0x16   :  { %p365_p10 = pnand %p363_p9, %p360_p8 }
  0x18   :  { %368 = shalt.err (!%p365_p10)
}
  0x19   :  { %s369_s6 = scalar_lea.vmem %s460_s15, 256  ;;  %p374_p12 = scmp.lt.s32.totalorder %s460_s15, %s460_s15 }
  0x1a   :  { %p370_p11 = scmp.ne.s32.totalorder %s460_s15, %s369_s6  ;;  %p375_p13 = scmp.lt.s32.totalorder %s369_s6, %s369_s6 }
  0x1c   :  { %p376_p0 = por %p375_p13, %p374_p12 }
  0x1e   :  { %p377_p1 = pnand %p376_p0, %p370_p11 }
  0x20   :  { %380 = shalt.err (!%p377_p1)
}
  0x21   :  { %s433_s1 = smov 128   ;;  %s434_s7 = smov 8  }
  0x22   :  { %22 = dma.hbm_to_vmem [thread:$0]  %s538_s0, 256, %s460_s15, [#allocation3], %s433_s1, %s433_s1, %s434_s7  }
  0x23   :  { %s435_s10 = smov [#allocation7]   ;;  %s381_s14 = scalar_lea.hbm %s540_s2, 128 }
  0x24   :  { %s39_s11 = sshll.u32 %s435_s10, 4  ;;  %p382_p2 = scmp.ne.s32.totalorder %s540_s2, %s381_s14  ;;  %s40_s11 = int_to_ptr.vmem [resolvable:$true] %s39_s11 }
  0x25   :  { %p385_p3 = scmp.lt.u32.totalorder %s381_s14, %s540_s2 }
  0x27   :  { %p387_p4 = pnand %p385_p3, %p382_p2 }
  0x29   :  { %390 = shalt.err (!%p387_p4)
}
  0x2a   :  { %s391_s20 = scalar_lea.vmem %s40_s11, 128  ;;  %p396_p6 = scmp.lt.s32.totalorder %s40_s11, %s40_s11 }
  0x2b   :  { %p392_p5 = scmp.ne.s32.totalorder %s40_s11, %s391_s20  ;;  %p397_p7 = scmp.lt.s32.totalorder %s391_s20, %s391_s20 }
  0x2d   :  { %p398_p8 = por %p397_p7, %p396_p6 }
  0x2f   :  { %p399_p9 = pnand %p398_p8, %p392_p5 }
  0x31   :  { %402 = shalt.err (!%p399_p9)
}
  0x32   :  { %42 = dma.hbm_to_vmem [thread:$0]  %s540_s2, 128, %s40_s11, [#allocation6]  }
  0x33   :  { %425 = dma.done.wait [#allocation3], 256  }
  0x34   :  { %426 = vsyncadd [#allocation3], 4294967040 }
  0x35   :  { %427 = dma.done.wait [#allocation6], 192  }
  0x36   :  { %428 = vsyncadd [#allocation6], 4294967104  ;;  %vm60_vm0 = vcmask 1043456   ;;  %v506_v0 = vld [vmem:[#allocation2] sm:$0xff]  ;;  %v508_v1 = vld [vmem:[#allocation2 + $0x8] sm:$0xff]  ;;  %v436_v11 = vmov 0.0   ;;  %v76_v12 = vlaneseq }
  0x37   :  { %v56_v2 = vcombine.high %v506_v0, %v506_v0  ;;  %v61_v3 = vsel %vm60_vm0, %v506_v0, 0.0  ;;  %v57_v4 = vcombine.high %v508_v1, %v508_v1  ;;  %v66_v6 = vsel %vm60_vm0, %v508_v1, 0.0  ;;  %v73_v10 = vld [vmem:[#allocation5] sm:$0xf]  ;;  %312 = vmatprep.subr.mxu0 %v436_v11  ;;  %317 = vmatprep.subr.mxu1 %v436_v11  ;;  %v169_v23 = vld [vmem:[#allocation7] sm:$0xff]  ;;  %s439_s2 = smov [#allocation8]  }
  0x38   :  { %vm437_vm1 = vmmov 0   ;;  %313 = vmatpush3.msk.msra.mxu0 %vm60_vm0, %v73_v10  ;;  %v77_v13 = vand.u32 127, %v76_v12  ;;  %v79_v14 = vshrl.u32 %v76_v12, 7  ;;  %vm86_vm2 = vcmask 1041409   ;;  %318 = vmatpush3.msra.mxu1 %v169_v23  ;;  %s291_s21 = sshll.u32 %s439_s2, 4  ;;  %s292_s21 = int_to_ptr.vmem [resolvable:$true] %s291_s21 }
  0x39   :  { %v62_v5 = vsel %vm60_vm0, %v56_v2, 0.0  ;;  %v67_v7 = vsel %vm60_vm0, %v57_v4, 0.0  ;;  %314 = vmatprep.mubr.msk.f32.mxu0 %vm437_vm1, %v436_v11  ;;  %319 = vmatprep.mubr.msk.f32.mxu1 %vm437_vm1, %v436_v11  ;;  %vm88_vm3 = vcmask 31744   ;;  %vm170_vm4 = vcmask 64512   ;;  %s403_s22 = scalar_lea.vmem %s292_s21, 256  ;;  %p408_p11 = scmp.lt.s32.totalorder %s292_s21, %s292_s21 }
  0x3a   :  { %v63_v8 = vadd.f32 %v62_v5, %v61_v3  ;;  %v68_v9 = vadd.f32 %v67_v7, %v66_v6  ;;  %v80_v16 = vsub.s32 %v77_v13, %v79_v14  ;;  %v252_v36 = vsub.s32 0, %v79_v14  ;;  %p404_p10 = scmp.ne.s32.totalorder %s292_s21, %s403_s22  ;;  %p409_p12 = scmp.lt.s32.totalorder %s403_s22, %s403_s22 }
  0x3b   :  { %v259_v39 = vsub.s32 1, %v79_v14  ;;  %v438_v41 = vmov 839922192  }
  0x3c   :  { %64 = vadd.xlane.f32.xlu0 %v63_v8  ;;  %v267_v42 = vunpack.c.l.s4 %v438_v41  ;;  %p410_p13 = por %p409_p12, %p408_p11 }
  0x3e   :  { %v268_v43 = vunpack.c.0.s8 %v267_v42  ;;  %p411_p0 = pnand %p410_p13, %p404_p10 }
  0x40   :  { %69 = vadd.xlane.f32.xlu0 %v68_v9  ;;  %v271_v44 = vsub.s32 %v268_v43, %v79_v14 }
  0xc9   :  { %v65_v15 = vpop.xlane.xlu0 %64 }
  0xca   :  { %v71_v17 = vmul.f32 0.00390625, %v65_v15 }
  0xcc   :  { %v81_v20 = vrot.slane %v71_v17, %v80_v16 }
  0xcd   :  { %v70_v18 = vpop.xlane.xlu0 %69 }
  0xce   :  { %v72_v19 = vmul.f32 0.00390625, %v70_v18 }
  0xd0   :  { %v85_v21 = vrot.slane %v72_v19, %v80_v16 }
  0xd2   :  { %v87_v22 = vsel %vm86_vm2, %v85_v21, %v81_v20 }
  0xd3   :  { %315 = vmatmul.mubr.msk.f32.vlgmr.msra.gmra.mrb[0].mxu0 %vm88_vm3, %v87_v22 }
 0x1a6   :  { %v160_v24 = vpop.f32.mrb[0].mxu0 }
 0x1a7   :  { %v164_v25 = vadd.f32 3.0, %v160_v24  ;;  %v316_v26 = vpop.f32.mrb[1].mxu0 }
 0x1a9   :  { %v165_v27 = vmax.f32 %v164_v25, 0.0 }
 0x1ab   :  { %v166_v28 = vmin.f32 %v165_v27, 6.0 }
 0x1ad   :  { %v167_v29 = vmul.f32 %v166_v28, %v160_v24 }
 0x1af   :  { %v168_v30 = vmul.f32 0.16666667, %v167_v29 }
 0x1b1   :  { %320 = vmatmul.mubr.msk.f32.vlgmr.msra.gmra.mrb[0].mxu1 %vm170_vm4, %v168_v30 }
 0x284   :  { %v240_v31 = vpop.f32.mrb[0].mxu1 }
 0x285   :  { %v307_v32 = vmul.f32 -1.442695, %v240_v31  ;;  %v321_v33 = vpop.f32.mrb[1].mxu1 }
 0x287   :  { %333 = vpow2.f32 %v307_v32 }
 0x291   :  { %v334_v34 = vpop.eup %333 }
 0x292   :  { %v247_v35 = vadd.f32 1.0, %v334_v34 }
 0x294   :  { %335 = vrcp.f32 %v247_v35 }
 0x29e   :  { %v336_v37 = vpop.eup %335 }
 0x29f   :  { %v253_v38 = vrot.slane %v336_v37, %v252_v36  ;;  %v260_v40 = vrot.slane %v336_v37, %v259_v39 }
 0x2a1   :  { %255 = vbcast.lane.b32.xlu1 %v253_v38, 256 }
 0x2a5   :  { %262 = vbcast.lane.b32.xlu1 %v260_v40, 256 }
 0x313   :  { %v256_v45 = vpop.permute.xlu1 %255 }
 0x314   :  { %v272_v46 = vrot.slane %v256_v45, %v271_v44 }
 0x316   :  { %v282_v47 = vmul.f32 %v272_v46, %v506_v0 }
 0x317   :  { %v263_v48 = vpop.permute.xlu1 %262 }
 0x318   :  { %284 = vst [vmem:[#allocation8] sm:$0xff] %v282_v47  ;;  %v279_v49 = vrot.slane %v263_v48, %v271_v44 }
 0x31a   :  { %v283_v50 = vmul.f32 %v279_v49, %v508_v1 }
 0x31c   :  { %285 = vst [vmem:[#allocation8 + $0x8] sm:$0xff] %v283_v50 }
 0x31d   :  { %414 = shalt.err (!%p411_p0)
}
 0x31e   :  { %s415_s25 = scalar_lea.hbm %s541_s3, 256 }
 0x31f   :  { %p416_p1 = scmp.ne.s32.totalorder %s541_s3, %s415_s25  ;;  %p419_p2 = scmp.lt.u32.totalorder %s415_s25, %s541_s3 }
 0x321   :  { %p421_p3 = pnand %p419_p2, %p416_p1 }
 0x323   :  { %424 = shalt.err (!%p421_p3)
}
 0x324   :  { %297 = dma.vmem_to_hbm [thread:$0]  %s292_s21, 256, %s541_s3, [#allocation4], %s433_s1, %s433_s1, %s434_s7  }
 0x325   :  { %429 = dma.done.wait [#allocation4], 256  }
 0x326   :  { %430 = vsyncadd [#allocation4], 4294967040 }
 0x327   :  { %301 = vsyncpa [#allocation3], 1 }
 0x328   :  { %302 = vsyncpa [#allocation6], 1 }
 0x329   :  { %303 = vsyncpa [#allocation4], 1 }

</bundles_post_ra>
